<compile_context>
chip_gen: v5e
topology: v5e:2x2
jax: 0.10.0
libtpu: 0.0.40
codegen_flags: <defaults>
</compile_context>

<pallas_src>
import jax
import jax.numpy as jnp
from jax.experimental import pallas as pl
from jax.experimental.pallas import tpu as pltpu


LN_EPS = 1e-5  # PyTorch nn.LayerNorm default


def _round_up(x, m):
    return (x + m - 1) // m * m


def ffn_kernel(x_ref, w1_ref, b1_ref, w2_ref, b2_ref, gamma_ref, beta_ref,
               o_ref, acc_ref):
    # Grid: (token tiles, F chunks).  Axis 1 is the reduction over ffn_dim.
    k = pl.program_id(1)

    @pl.when(k == 0)
    def _():
        acc_ref[...] = jnp.zeros_like(acc_ref)

    # First matmul + bias + relu on this F-chunk.  Operands stay in their
    # native dtype (bf16 hits the MXU bf16 path); accumulation is f32.
    x = x_ref[...]
    h = jnp.dot(x, w1_ref[...], preferred_element_type=jnp.float32)
    h = jnp.maximum(h + b1_ref[...].astype(jnp.float32), 0.0)

    # Second matmul: accumulate this chunk's partial (tm, D) contribution.
    w2 = w2_ref[...]
    acc_ref[...] += jnp.dot(h.astype(w2.dtype), w2,
                            preferred_element_type=jnp.float32)

    @pl.when(k == pl.num_programs(1) - 1)
    def _():
        d = o_ref.shape[-1]
        inv_d = jnp.float32(1.0 / d)
        # dropout == identity (eval) -> bias + residual.
        y = (acc_ref[...] + b2_ref[...].astype(jnp.float32)
             + x_ref[...].astype(jnp.float32))
        # LayerNorm over model_dim: sum-based (one XLU reduction reused),
        # 1/D folded into VPU multiplies, rsqrt on the EUP.
        mean = jnp.sum(y, axis=-1, keepdims=True) * inv_d
        centered = y - mean
        var = jnp.sum(centered * centered, axis=-1, keepdims=True) * inv_d
        y_norm = centered * jax.lax.rsqrt(var + jnp.float32(LN_EPS))
        out = (y_norm * gamma_ref[...].astype(jnp.float32)
               + beta_ref[...].astype(jnp.float32))
        o_ref[...] = out.astype(o_ref.dtype)


def positional_wise_ffn(x, w1, b1, w2, b2, gamma, beta, *, tm=256, tf=512):
    """
    x:     (batch, seq, model_dim)
    w1:    (model_dim, ffn_dim)   (already transposed from PyTorch (out, in))
    b1:    (ffn_dim,)
    w2:    (ffn_dim, model_dim)
    b2, gamma, beta: (model_dim,)
    """
    B, S, D = x.shape
    F = w1.shape[1]
    T = B * S
    x2d = x.reshape(T, D)

    # --- token-axis tiling: clamp for small inputs, zero-pad ragged tail ---
    sub = 16 if x.dtype == jnp.bfloat16 else 8   # sublane packing
    tm_eff = _round_up(min(tm, _round_up(T, sub)), sub)
    T_pad = _round_up(T, tm_eff)
    if T_pad != T:
        x2d = jnp.pad(x2d, ((0, T_pad - T), (0, 0)))

    # --- F-axis (reduction) tiling ---------------------------------------
    # Single chunk when F fits; otherwise chunk size is a multiple of 128 so
    # every weight/bias block is lane-aligned.  Zero padding of F is exact
    # because relu(0 + b1_pad=0) @ w2_pad=0 contributes 0.
    if F <= tf:
        tf_eff, F_pad = F, F
    else:
        tf_eff = max(128, (tf // 128) * 128)
        F_pad = _round_up(F, tf_eff)
    if F_pad != F:
        w1 = jnp.pad(w1, ((0, 0), (0, F_pad - F)))
        b1 = jnp.pad(b1, ((0, F_pad - F),))
        w2 = jnp.pad(w2, ((0, F_pad - F), (0, 0)))

    b1r = b1.reshape(1, F_pad)
    b2r = b2.reshape(1, D)
    gammar = gamma.reshape(1, D)
    betar = beta.reshape(1, D)

    n_tok_tiles = T_pad // tm_eff
    n_f_tiles = F_pad // tf_eff

    itemsize = jnp.dtype(x.dtype).itemsize
    w_itemsize = jnp.dtype(w1.dtype).itemsize
    cost = pl.CostEstimate(
        flops=4 * T_pad * D * F_pad,                       # two matmuls
        transcendentals=T_pad,                             # rsqrt per row
        bytes_accessed=(2 * T_pad * D * itemsize           # x in + out
                        + n_tok_tiles * 2 * D * F_pad * w_itemsize),
    )

    out2d = pl.pallas_call(
        ffn_kernel,
        out_shape=jax.ShapeDtypeStruct((T_pad, D), x.dtype),
        grid_spec=pltpu.PrefetchScalarGridSpec(
            num_scalar_prefetch=0,
            grid=(n_tok_tiles, n_f_tiles),
            in_specs=[
                pl.BlockSpec((tm_eff, D), lambda i, k: (i, 0)),   # x tile (resident over k)
                pl.BlockSpec((D, tf_eff), lambda i, k: (0, k)),   # w1 chunk
                pl.BlockSpec((1, tf_eff), lambda i, k: (0, k)),   # b1 chunk
                pl.BlockSpec((tf_eff, D), lambda i, k: (k, 0)),   # w2 chunk
                pl.BlockSpec((1, D), lambda i, k: (0, 0)),        # b2
                pl.BlockSpec((1, D), lambda i, k: (0, 0)),        # gamma
                pl.BlockSpec((1, D), lambda i, k: (0, 0)),        # beta
            ],
            out_specs=pl.BlockSpec((tm_eff, D), lambda i, k: (i, 0)),
            scratch_shapes=[pltpu.VMEM((tm_eff, D), jnp.float32)],
        ),
        compiler_params=pltpu.CompilerParams(
            dimension_semantics=("parallel", "arbitrary"),
            vmem_limit_bytes=48 * 1024 * 1024,   # fits v7x's 64 MiB with headroom
        ),
        cost_estimate=cost,
    )(x2d, w1, b1r, w2, b2r, gammar, betar)

    return out2d[:T].reshape(B, S, D)


def reference_ffn(x, w1, b1, w2, b2, gamma, beta):
    xf = x.astype(jnp.float32)
    h = jnp.maximum(xf @ w1.astype(jnp.float32) + b1, 0.0)
    y = h @ w2.astype(jnp.float32) + b2
    y = y + xf
    mean = jnp.mean(y, axis=-1, keepdims=True)
    var = jnp.mean((y - mean) ** 2, axis=-1, keepdims=True)
    yn = (y - mean) / jnp.sqrt(var + LN_EPS)
    return (yn * gamma + beta).astype(x.dtype)


if __name__ == "__main__":
    # Small shapes consistent with the module's forward: (batch, seq, model_dim)
    batch, seq, model_dim, ffn_dim = 2, 8, 32, 192

    key = jax.random.PRNGKey(0)
    k_x, k_w1, k_b1, k_w2, k_b2 = jax.random.split(key, 5)

    x = jax.random.normal(k_x, (batch, seq, model_dim), dtype=jnp.float32)

    lim1 = 1.0 / (model_dim ** 0.5)
    lim2 = 1.0 / (ffn_dim ** 0.5)
    w1 = jax.random.uniform(k_w1, (model_dim, ffn_dim), minval=-lim1, maxval=lim1,
                            dtype=jnp.float32)
    b1 = jax.random.uniform(k_b1, (ffn_dim,), minval=-lim1, maxval=lim1,
                            dtype=jnp.float32)
    w2 = jax.random.uniform(k_w2, (ffn_dim, model_dim), minval=-lim2, maxval=lim2,
                            dtype=jnp.float32)
    b2 = jax.random.uniform(k_b2, (model_dim,), minval=-lim2, maxval=lim2,
                            dtype=jnp.float32)
    gamma = jnp.ones((model_dim,), dtype=jnp.float32)
    beta = jnp.zeros((model_dim,), dtype=jnp.float32)

    # Path 1: single F chunk (ffn_dim <= tf), single token tile.
    out = positional_wise_ffn(x, w1, b1, w2, b2, gamma, beta)
    out = jax.block_until_ready(out)

    ref = reference_ffn(x, w1, b1, w2, b2, gamma, beta)
    assert out.shape == (batch, seq, model_dim)
    assert jnp.allclose(out, ref, atol=1e-4, rtol=1e-4), "mismatch vs reference"

    # Path 2: ragged token count (3*7=21 tokens, padded) + multi-chunk F
    # reduction with F padding (192 -> 256, chunks of 128).
    x2 = jax.random.normal(k_x, (3, 7, model_dim), dtype=jnp.float32)
    out2 = jax.block_until_ready(
        positional_wise_ffn(x2, w1, b1, w2, b2, gamma, beta, tm=16, tf=128))
    ref2 = reference_ffn(x2, w1, b1, w2, b2, gamma, beta)
    assert jnp.allclose(out2, ref2, atol=1e-4, rtol=1e-4), "mismatch (ragged)"

    print("KERNEL_OK")
</pallas_src>

<mosaic_0001>
module attributes {stable_mosaic.version = 11 : i64} {
  func.func @ffn_kernel(%arg0: i32, %arg1: i32, %arg2: memref<16x32xf32, #tpu.memory_space<vmem>>, %arg3: memref<32x192xf32, #tpu.memory_space<vmem>>, %arg4: memref<1x192xf32, #tpu.memory_space<vmem>>, %arg5: memref<192x32xf32, #tpu.memory_space<vmem>>, %arg6: memref<1x32xf32, #tpu.memory_space<vmem>>, %arg7: memref<1x32xf32, #tpu.memory_space<vmem>>, %arg8: memref<1x32xf32, #tpu.memory_space<vmem>>, %arg9: memref<16x32xf32, #tpu.memory_space<vmem>>, %arg10: memref<16x32xf32, #tpu.memory_space<vmem>>) attributes {dimension_semantics = [#tpu.dimension_semantics<parallel>, #tpu.dimension_semantics<arbitrary>], iteration_bounds = array<i64: 1, 1>, scalar_prefetch = 0 : i64, scratch_operands = 1 : i64, tpu.core_type = #tpu.core_type<tc>, window_params = [{transform_indices = @transform_0, window_bounds = array<i64: 16, 32>}, {transform_indices = @transform_1, window_bounds = array<i64: 32, 192>}, {transform_indices = @transform_2, window_bounds = array<i64: 1, 192>}, {transform_indices = @transform_3, window_bounds = array<i64: 192, 32>}, {pipeline_mode = #tpu.pipeline_mode<synchronous>, transform_indices = @transform_4, window_bounds = array<i64: 1, 32>}, {pipeline_mode = #tpu.pipeline_mode<synchronous>, transform_indices = @transform_5, window_bounds = array<i64: 1, 32>}, {pipeline_mode = #tpu.pipeline_mode<synchronous>, transform_indices = @transform_6, window_bounds = array<i64: 1, 32>}, {transform_indices = @transform_7, window_bounds = array<i64: 16, 32>}]} {
    %c0_i32 = arith.constant 0 : i32
    %0 = arith.cmpi eq, %arg1, %c0_i32 : i32
    %1 = arith.extui %0 : i1 to i32
    %c0_i32_0 = arith.constant 0 : i32
    %2 = arith.cmpi ne, %1, %c0_i32_0 : i32
    scf.if %2 {
      %cst_16 = arith.constant 0.000000e+00 : f32
      %19 = vector.broadcast %cst_16 : f32 to vector<16x32xf32>
      %c0_17 = arith.constant 0 : index
      %c0_18 = arith.constant 0 : index
      %20 = vector.load %arg10[%c0_17, %c0_18] : memref<16x32xf32, #tpu.memory_space<vmem>>, vector<16x32xf32>
      tpu.vector_store %arg10[%c0_17, %c0_18], %19 {strides = array<i32>} : memref<16x32xf32, #tpu.memory_space<vmem>>, vector<16x32xf32>,
    } else {
    }
    %c0 = arith.constant 0 : index
    %c0_1 = arith.constant 0 : index
    %3 = vector.load %arg2[%c0, %c0_1] : memref<16x32xf32, #tpu.memory_space<vmem>>, vector<16x32xf32>
    %c0_2 = arith.constant 0 : index
    %c0_3 = arith.constant 0 : index
    %4 = vector.load %arg3[%c0_2, %c0_3] : memref<32x192xf32, #tpu.memory_space<vmem>>, vector<32x192xf32>
    %cst = arith.constant dense<0.000000e+00> : vector<16x192xf32>
    %5 = tpu.matmul %3, %4, %cst {dimension_numbers = #tpu.dot_dimension_numbers<[1], [0], [0], [1], [0, 0, 1, 1], [], []>} : vector<16x32xf32>, vector<32x192xf32>, vector<16x192xf32> -> vector<16x192xf32>
    %c0_4 = arith.constant 0 : index
    %c0_5 = arith.constant 0 : index
    %6 = vector.load %arg4[%c0_4, %c0_5] : memref<1x192xf32, #tpu.memory_space<vmem>>, vector<1x192xf32>
    %7 = vector.broadcast %6 : vector<1x192xf32> to vector<16x192xf32>
    %8 = arith.addf %5, %7 : vector<16x192xf32>
    %cst_6 = arith.constant 0.000000e+00 : f32
    %9 = vector.broadcast %cst_6 : f32 to vector<16x192xf32>
    %10 = arith.maximumf %8, %9 : vector<16x192xf32>
    %c0_7 = arith.constant 0 : index
    %c0_8 = arith.constant 0 : index
    %11 = vector.load %arg5[%c0_7, %c0_8] : memref<192x32xf32, #tpu.memory_space<vmem>>, vector<192x32xf32>
    %c0_9 = arith.constant 0 : index
    %c0_10 = arith.constant 0 : index
    %12 = vector.load %arg10[%c0_9, %c0_10] : memref<16x32xf32, #tpu.memory_space<vmem>>, vector<16x32xf32>
    %cst_11 = arith.constant dense<0.000000e+00> : vector<16x32xf32>
    %13 = tpu.matmul %10, %11, %cst_11 {dimension_numbers = #tpu.dot_dimension_numbers<[1], [0], [0], [1], [0, 0, 1, 1], [], []>} : vector<16x192xf32>, vector<192x32xf32>, vector<16x32xf32> -> vector<16x32xf32>
    %14 = arith.addf %12, %13 : vector<16x32xf32>
    %c0_12 = arith.constant 0 : index
    %c0_13 = arith.constant 0 : index
    %15 = vector.load %arg10[%c0_12, %c0_13] : memref<16x32xf32, #tpu.memory_space<vmem>>, vector<16x32xf32>
    tpu.vector_store %arg10[%c0_12, %c0_13], %14 {strides = array<i32>} : memref<16x32xf32, #tpu.memory_space<vmem>>, vector<16x32xf32>,
    %c0_i32_14 = arith.constant 0 : i32
    %16 = arith.cmpi eq, %arg1, %c0_i32_14 : i32
    %17 = arith.extui %16 : i1 to i32
    %c0_i32_15 = arith.constant 0 : i32
    %18 = arith.cmpi ne, %17, %c0_i32_15 : i32
    scf.if %18 {
      %c0_16 = arith.constant 0 : index
      %c0_17 = arith.constant 0 : index
      %19 = vector.load %arg10[%c0_16, %c0_17] : memref<16x32xf32, #tpu.memory_space<vmem>>, vector<16x32xf32>
      %c0_18 = arith.constant 0 : index
      %c0_19 = arith.constant 0 : index
      %20 = vector.load %arg6[%c0_18, %c0_19] : memref<1x32xf32, #tpu.memory_space<vmem>>, vector<1x32xf32>
      %21 = vector.broadcast %20 : vector<1x32xf32> to vector<16x32xf32>
      %22 = arith.addf %19, %21 : vector<16x32xf32>
      %c0_20 = arith.constant 0 : index
      %c0_21 = arith.constant 0 : index
      %23 = vector.load %arg2[%c0_20, %c0_21] : memref<16x32xf32, #tpu.memory_space<vmem>>, vector<16x32xf32>
      %24 = arith.addf %22, %23 : vector<16x32xf32>
      %cst_22 = arith.constant dense<0.000000e+00> : vector<16xf32>
      %25 = vector.multi_reduction <add>, %24, %cst_22 [1] : vector<16x32xf32> to vector<16xf32>
      %26 = vector.shape_cast %25 : vector<16xf32> to vector<16x1xf32>
      %cst_23 = arith.constant 3.125000e-02 : f32
      %27 = vector.broadcast %cst_23 : f32 to vector<16x1xf32>
      %28 = arith.mulf %26, %27 : vector<16x1xf32>
      %29 = vector.broadcast %28 : vector<16x1xf32> to vector<16x32xf32>
      %30 = arith.subf %24, %29 : vector<16x32xf32>
      %31 = arith.mulf %30, %30 : vector<16x32xf32>
      %cst_24 = arith.constant dense<0.000000e+00> : vector<16xf32>
      %32 = vector.multi_reduction <add>, %31, %cst_24 [1] : vector<16x32xf32> to vector<16xf32>
      %33 = vector.shape_cast %32 : vector<16xf32> to vector<16x1xf32>
      %cst_25 = arith.constant 3.125000e-02 : f32
      %34 = vector.broadcast %cst_25 : f32 to vector<16x1xf32>
      %35 = arith.mulf %33, %34 : vector<16x1xf32>
      %cst_26 = arith.constant 9.99999974E-6 : f32
      %36 = vector.broadcast %cst_26 : f32 to vector<16x1xf32>
      %37 = arith.addf %35, %36 : vector<16x1xf32>
      %38 = math.rsqrt %37 : vector<16x1xf32>
      %39 = vector.broadcast %38 : vector<16x1xf32> to vector<16x32xf32>
      %40 = arith.mulf %30, %39 : vector<16x32xf32>
      %c0_27 = arith.constant 0 : index
      %c0_28 = arith.constant 0 : index
      %41 = vector.load %arg7[%c0_27, %c0_28] : memref<1x32xf32, #tpu.memory_space<vmem>>, vector<1x32xf32>
      %42 = vector.broadcast %41 : vector<1x32xf32> to vector<16x32xf32>
      %43 = arith.mulf %40, %42 : vector<16x32xf32>
      %c0_29 = arith.constant 0 : index
      %c0_30 = arith.constant 0 : index
      %44 = vector.load %arg8[%c0_29, %c0_30] : memref<1x32xf32, #tpu.memory_space<vmem>>, vector<1x32xf32>
      %45 = vector.broadcast %44 : vector<1x32xf32> to vector<16x32xf32>
      %46 = arith.addf %43, %45 : vector<16x32xf32>
      %c0_31 = arith.constant 0 : index
      %c0_32 = arith.constant 0 : index
      %47 = vector.load %arg9[%c0_31, %c0_32] : memref<16x32xf32, #tpu.memory_space<vmem>>, vector<16x32xf32>
      tpu.vector_store %arg9[%c0_31, %c0_32], %46 {strides = array<i32>} : memref<16x32xf32, #tpu.memory_space<vmem>>, vector<16x32xf32>,
    } else {
    }
    return
  }
  func.func @transform_0(%arg0: i32, %arg1: i32) -> (i32, i32) {
    %c0_i32 = arith.constant 0 : i32
    %c0_i32_0 = arith.constant 0 : i32
    return %arg0, %c0_i32 : i32, i32
  }
  func.func @transform_1(%arg0: i32, %arg1: i32) -> (i32, i32) {
    %c0_i32 = arith.constant 0 : i32
    %c0_i32_0 = arith.constant 0 : i32
    return %c0_i32, %arg1 : i32, i32
  }
  func.func @transform_2(%arg0: i32, %arg1: i32) -> (i32, i32) {
    %c0_i32 = arith.constant 0 : i32
    %c0_i32_0 = arith.constant 0 : i32
    return %c0_i32, %arg1 : i32, i32
  }
  func.func @transform_3(%arg0: i32, %arg1: i32) -> (i32, i32) {
    %c0_i32 = arith.constant 0 : i32
    %c0_i32_0 = arith.constant 0 : i32
    return %arg1, %c0_i32 : i32, i32
  }
  func.func @transform_4(%arg0: i32, %arg1: i32) -> (i32, i32) {
    %c0_i32 = arith.constant 0 : i32
    %c0_i32_0 = arith.constant 0 : i32
    %c0_i32_1 = arith.constant 0 : i32
    return %c0_i32, %c0_i32_0 : i32, i32
  }
  func.func @transform_5(%arg0: i32, %arg1: i32) -> (i32, i32) {
    %c0_i32 = arith.constant 0 : i32
    %c0_i32_0 = arith.constant 0 : i32
    %c0_i32_1 = arith.constant 0 : i32
    return %c0_i32, %c0_i32_0 : i32, i32
  }
  func.func @transform_6(%arg0: i32, %arg1: i32) -> (i32, i32) {
    %c0_i32 = arith.constant 0 : i32
    %c0_i32_0 = arith.constant 0 : i32
    %c0_i32_1 = arith.constant 0 : i32
    return %c0_i32, %c0_i32_0 : i32, i32
  }
  func.func @transform_7(%arg0: i32, %arg1: i32) -> (i32, i32) {
    %c0_i32 = arith.constant 0 : i32
    %c0_i32_0 = arith.constant 0 : i32
    return %arg0, %c0_i32 : i32, i32
  }
}

</mosaic_0001>

<bundles_post_ra>
// kernel: tpu_custom_call.1
= control target key start
LH: loop header
LB: loop body
LE: loop exit
PB: predicated region body
PF: predicated region fallthrough
CT: control target
= control target key end

     0   :  { %vm31_vm0 = vcmask 261120   ;;  %s509_s0 = inlined_call_operand.vmem [shape: f32[16,32], index: 0, kind: input, shape index: {}]   ;;  %s510_s1 = inlined_call_operand.vmem [shape: f32[32,192], index: 1, kind: input, shape index: {}]   ;;  %s511_s2 = inlined_call_operand.vmem [shape: f32[1,192], index: 2, kind: input, shape index: {}]   ;;  %s512_s3 = inlined_call_operand.vmem [shape: f32[192,32], index: 3, kind: input, shape index: {}]   ;;  %s513_s4 = inlined_call_operand.vmem [shape: f32[1,32], index: 4, kind: input, shape index: {}]   ;;  %s514_s5 = inlined_call_operand.vmem [shape: f32[1,32], index: 5, kind: input, shape index: {}]   ;;  %s515_s6 = inlined_call_operand.vmem [shape: f32[1,32], index: 6, kind: input, shape index: {}]   ;;  %s516_s7 = inlined_call_operand.hbm [shape: f32[16,32], index: 7, kind: output, shape index: {}]  }
   0x1   :  { %v42_v0 = vld [vmem:[%s510_s1 + $0x30] sm:$0xff]  ;;  %v43_v1 = vld [vmem:[%s510_s1 + $0x38] sm:$0xff]  ;;  %v40_v2 = vld [vmem:[%s510_s1 + $0x20] sm:$0xff] }
   0x2   :  { %69 = vmatpush.msra.mxu0 %v42_v0  ;;  %92 = vmatpush.msra.mxu1 %v43_v1  ;;  %v41_v3 = vld [vmem:[%s510_s1 + $0x28] sm:$0xff]  ;;  %v38_v4 = vld [vmem:[%s510_s1 + $0x10] sm:$0xff]  ;;  %v39_v5 = vld [vmem:[%s510_s1 + $0x18] sm:$0xff] }
   0x3   :  { %v122_v6 = vld [vmem:[%s512_s3 + $0x78] sm:$0xff]  ;;  %v121_v7 = vld [vmem:[%s512_s3 + $0x70] sm:$0xff]  ;;  %v36_v8 = vld [vmem:[%s510_s1] sm:$0xff] }
   0x4   :  { %70 = vmatpush.msra.mxu0 %v40_v2  ;;  %93 = vmatpush.msra.mxu1 %v41_v3  ;;  %v37_v9 = vld [vmem:[%s510_s1 + $0x8] sm:$0xff]  ;;  %v401_v10 = vld [vmem:[%s509_s0] sm:$0xff]  ;;  %v130_v12 = vld [vmem:[%s512_s3 + $0xb8] sm:$0xff] }
   0x5   :  { %140 = vmatpush.msra.mxu2 %v122_v6  ;;  %v120_v11 = vld [vmem:[%s512_s3 + $0x68] sm:$0xff]  ;;  %v119_v13 = vld [vmem:[%s512_s3 + $0x60] sm:$0xff]  ;;  %v129_v14 = vld [vmem:[%s512_s3 + $0xb0] sm:$0xff]  ;;  %171 = vmatpush.msra.mxu3 %v130_v12 }
   0x6   :  { %71 = vmatpush.msra.mxu0 %v38_v4  ;;  %94 = vmatpush.msra.mxu1 %v39_v5  ;;  %v118_v15 = vld [vmem:[%s512_s3 + $0x58] sm:$0xff]  ;;  %v128_v16 = vld [vmem:[%s512_s3 + $0xa8] sm:$0xff] }
   0x7   :  { %141 = vmatpush.msra.mxu2 %v121_v7  ;;  %172 = vmatpush.msra.mxu3 %v129_v14 }
   0x8   :  { %72 = vmatpush.msra.mxu0 %v36_v8  ;;  %95 = vmatpush.msra.mxu1 %v37_v9 }
   0x9   :  { %281 = vmatmul.msk.f32.vlgmr.msra.gmra.mxu0 %vm31_vm0, %v401_v10  ;;  %283 = vmatmul.msk.f32.vlgmr.msra.gmra.mxu1 %vm31_vm0, %v401_v10 }
   0xa   :  { %142 = vmatpush.msra.mxu2 %v120_v11 }
   0xc   :  { %143 = vmatpush.msra.mxu2 %v119_v13 }
   0xd   :  { %12 = vsyncpa [#allocation4], 0  ;;  %v117_v17 = vld [vmem:[%s512_s3 + $0x50] sm:$0xff]  ;;  %v127_v18 = vld [vmem:[%s512_s3 + $0xa0] sm:$0xff]  ;;  %173 = vmatpush.msra.mxu3 %v128_v16  ;;  %vm133_vm1 = vcmask 523264   ;;  %v324_v49 = vmov 0.0  }
   0xe   :  { %v434_v19 = vld [vmem:[%s509_s0 + $0x8] sm:$0xff]  ;;  %144 = vmatpush.msra.mxu2 %v118_v15  ;;  %v126_v21 = vld [vmem:[%s512_s3 + $0x98] sm:$0xff]  ;;  %v115_v22 = vld [vmem:[%s512_s3 + $0x40] sm:$0xff]  ;;  %32 = vst.msk [vmem:[#allocation2] sm:$0xff] %vm31_vm0, %v324_v49  ;;  %s269_s1 = sshll.u32 %s516_s7, 4  ;;  %s327_s27 = smov 8   ;;  %s270_s1 = int_to_ptr.hbm [resolvable:$true] %s269_s1 }
   0xf   :  { %v116_v20 = vld [vmem:[%s512_s3 + $0x48] sm:$0xff]  ;;  %174 = vmatpush.msra.mxu3 %v127_v18  ;;  %v114_v23 = vld [vmem:[%s512_s3 + $0x38] sm:$0xff]  ;;  %v113_v24 = vld [vmem:[%s512_s3 + $0x30] sm:$0xff]  ;;  %33 = vst.msk [vmem:[#allocation2 + $0x8] sm:$0xff] %vm31_vm0, %v324_v49 }
  0x10   :  { %145 = vmatpush.msra.mxu2 %v117_v17  ;;  %v112_v25 = vld [vmem:[%s512_s3 + $0x28] sm:$0xff]  ;;  %v111_v26 = vld [vmem:[%s512_s3 + $0x20] sm:$0xff]  ;;  %v110_v27 = vld [vmem:[%s512_s3 + $0x18] sm:$0xff] }
  0x11   :  { %282 = vmatmul.msk.f32.gmra.mxu0 %vm31_vm0, %v434_v19  ;;  %284 = vmatmul.msk.f32.gmra.mxu1 %vm31_vm0, %v434_v19  ;;  %v109_v28 = vld [vmem:[%s512_s3 + $0x10] sm:$0xff]  ;;  %v108_v30 = vld [vmem:[%s512_s3 + $0x8] sm:$0xff]  ;;  %v107_v32 = vld [vmem:[%s512_s3] sm:$0xff] }
  0x12   :  { %146 = vmatpush.msra.mxu2 %v116_v20  ;;  %175 = vmatpush.msra.mxu3 %v126_v21  ;;  %v125_v29 = vld [vmem:[%s512_s3 + $0x90] sm:$0xff]  ;;  %v124_v31 = vld [vmem:[%s512_s3 + $0x88] sm:$0xff]  ;;  %v123_v33 = vld [vmem:[%s512_s3 + $0x80] sm:$0xff] }
  0x13   :  { %v44_v34 = vld [vmem:[%s511_s2] sm:$0x3] }
  0x14   :  { %147 = vmatpush.msra.mxu2 %v115_v22  ;;  %176 = vmatpush.msra.mxu3 %v125_v29  ;;  %v46_v35 = vperm.slane %v44_v34, 0  ;;  %v47_v36 = vperm.slane %v44_v34, 1  ;;  %v291_v59 = vld [vmem:[%s513_s4] ss:$0 sm:$0xff] }
  0x15   :  { %v131_v51 = vld [vmem:[#allocation2] sm:$0xff] }
  0x16   :  { %148 = vmatpush.msra.mxu2 %v114_v23  ;;  %177 = vmatpush.msra.mxu3 %v124_v31  ;;  %v132_v56 = vld [vmem:[#allocation2 + $0x8] sm:$0xff]  ;;  %v292_v29 = vld [vmem:[%s514_s5] ss:$0 sm:$0xff]  ;;  %s325_s5 = smov [#allocation3]  }
  0x17   :  { %s267_s24 = sshll.u32 %s325_s5, 4  ;;  %s268_s24 = int_to_ptr.vmem [resolvable:$true] %s267_s24 }
  0x18   :  { %149 = vmatpush.msra.mxu2 %v113_v24  ;;  %178 = vmatpush.msra.mxu3 %v123_v33  ;;  %v293_v33 = vld [vmem:[%s515_s6] ss:$0 sm:$0xff]  ;;  %s326_s6 = smov 128  }
  0x1a   :  { %150 = vmatpush.msra.mxu2 %v112_v25 }
  0x1c   :  { %151 = vmatpush.msra.mxu2 %v111_v26 }
  0x1e   :  { %152 = vmatpush.msra.mxu2 %v110_v27 }
  0x20   :  { %153 = vmatpush.msra.mxu2 %v109_v28 }
  0x22   :  { %154 = vmatpush.msra.mxu2 %v108_v30 }
  0x24   :  { %155 = vmatpush.msra.mxu2 %v107_v32 }
  0x86   :  { %v74_v37 = vpop.f32.mrf.mxu0  ;;  %v97_v38 = vpop.f32.mrf.mxu1 }
  0x87   :  { %v75_v39 = vadd.f32 %v74_v37, %v46_v35  ;;  %v98_v40 = vadd.f32 %v97_v38, %v47_v36 }
  0x89   :  { %v103_v41 = vmax.f32 %v75_v39, 0.0  ;;  %v104_v42 = vmax.f32 %v98_v40, 0.0 }
  0x8b   :  { %156 = vmatmul.f32.vlgmr.msra.gmra.mxu2 %v103_v41  ;;  %285 = vmatmul.msk.f32.vlgmr.msra.gmra.mxu3 %vm133_vm1, %v104_v42 }
  0x8e   :  { %v77_v43 = vpop.f32.mrf.mxu0  ;;  %v100_v44 = vpop.f32.mrf.mxu1 }
  0x8f   :  { %v78_v45 = vadd.f32 %v77_v43, %v46_v35  ;;  %v101_v46 = vadd.f32 %v100_v44, %v47_v36 }
  0x91   :  { %v105_v47 = vmax.f32 %v78_v45, 0.0  ;;  %v106_v48 = vmax.f32 %v101_v46, 0.0 }
  0x93   :  { %159 = vmatmul.f32.gmra.mxu2 %v105_v47  ;;  %286 = vmatmul.msk.f32.gmra.mxu3 %vm133_vm1, %v106_v48 }
 0x10e   :  { %v157_v50 = vpop.f32.mrf.mxu2  ;;  %v180_v52 = vpop.f32.mrf.mxu3 }
 0x10f   :  { %v181_v53 = vadd.f32 %v180_v52, %v157_v50 }
 0x111   :  { %v186_v54 = vadd.f32 %v181_v53, %v131_v51 }
 0x113   :  { %188 = vst.msk [vmem:[#allocation2] sm:$0xff] %vm31_vm0, %v186_v54 }
 0x116   :  { %v160_v55 = vpop.f32.mrf.mxu2  ;;  %v183_v57 = vpop.f32.mrf.mxu3 }
 0x117   :  { %v184_v58 = vadd.f32 %v183_v57, %v160_v55 }
 0x119   :  { %v187_v60 = vadd.f32 %v184_v58, %v132_v56 }
 0x11a   :  { %v193_v61 = vld [vmem:[#allocation2] sm:$0xff] }
 0x11b   :  { %189 = vst.msk [vmem:[#allocation2 + $0x8] sm:$0xff] %vm31_vm0, %v187_v60  ;;  %v199_v62 = vadd.f32 %v291_v59, %v193_v61 }
 0x11d   :  { %v203_v63 = vadd.f32 %v199_v62, %v401_v10 }
 0x11f   :  { %v205_v0 = vsel %vm31_vm0, %v203_v63, 0.0 }
 0x120   :  { %206 = vadd.xlane.f32.xlu0 %v205_v0 }
 0x122   :  { %v194_v1 = vld [vmem:[#allocation2 + $0x8] sm:$0xff] }
 0x123   :  { %v200_v2 = vadd.f32 %v291_v59, %v194_v1 }
 0x125   :  { %v204_v3 = vadd.f32 %v200_v2, %v434_v19 }
 0x127   :  { %v208_v4 = vsel %vm31_vm0, %v204_v3, 0.0 }
 0x128   :  { %209 = vadd.xlane.f32.xlu0 %v208_v4 }
 0x193   :  { %v207_v5 = vpop.xlane.xlu0 %206 }
 0x194   :  { %v211_v6 = vmul.f32 0.03125, %v207_v5 }
 0x196   :  { %v213_v7 = vsub.f32 %v203_v63, %v211_v6 }
 0x198   :  { %v215_v8 = vmul.f32 %v213_v7, %v213_v7 }
 0x19a   :  { %v217_v9 = vsel %vm31_vm0, %v215_v8, 0.0 }
 0x19b   :  { %218 = vadd.xlane.f32.xlu1 %v217_v9  ;;  %v210_v11 = vpop.xlane.xlu0 %209 }
 0x19c   :  { %v212_v12 = vmul.f32 0.03125, %v210_v11 }
 0x19e   :  { %v214_v10 = vsub.f32 %v204_v3, %v212_v12 }
 0x1a0   :  { %v216_v13 = vmul.f32 %v214_v10, %v214_v10 }
 0x1a2   :  { %v220_v14 = vsel %vm31_vm0, %v216_v13, 0.0 }
 0x1a3   :  { %221 = vadd.xlane.f32.xlu1 %v220_v14 }
 0x20e   :  { %v219_v15 = vpop.xlane.xlu1 %218 }
 0x20f   :  { %v223_v16 = vmul.f32 0.03125, %v219_v15 }
 0x211   :  { %v225_v17 = vadd.f32 1e-05, %v223_v16 }
 0x213   :  { %294 = vrsqrt.f32 %v225_v17  ;;  %vm233_vm3 = vweird.f32 %v225_v17 }
 0x216   :  { %v222_v18 = vpop.xlane.xlu1 %221 }
 0x217   :  { %v224_v19 = vmul.f32 0.03125, %v222_v18 }
 0x219   :  { %v295_v20 = vpop.eup %294  ;;  %v226_v21 = vadd.f32 1e-05, %v224_v19 }
 0x21a   :  { %v228_v22 = vmul.f32 %v295_v20, %v225_v17  ;;  %vm234_vm2 = vweird.f32 %v295_v20 }
 0x21b   :  { %296 = vrsqrt.f32 %v226_v21  ;;  %vm235_vm4 = vmor %vm233_vm3, %vm234_vm2  ;;  %vm243_vm6 = vweird.f32 %v226_v21 }
 0x21c   :  { %v229_v23 = vmul.f32 %v295_v20, %v228_v22 }
 0x21e   :  { %v230_v24 = vmul.f32 0.5, %v229_v23 }
 0x220   :  { %v231_v25 = vsub.f32 1.5, %v230_v24 }
 0x221   :  { %v297_v26 = vpop.eup %296 }
 0x222   :  { %v232_v27 = vmul.f32 %v295_v20, %v231_v25  ;;  %v238_v28 = vmul.f32 %v297_v26, %v226_v21  ;;  %vm244_vm5 = vweird.f32 %v297_v26 }
 0x223   :  { %vm245_vm7 = vmor %vm243_vm6, %vm244_vm5 }
 0x224   :  { %v236_v30 = vsel %vm235_vm4, %v295_v20, %v232_v27  ;;  %v239_v31 = vmul.f32 %v297_v26, %v238_v28 }
 0x225   :  { %v247_v32 = vmul.f32 %v236_v30, %v213_v7 }
 0x226   :  { %v240_v34 = vmul.f32 0.5, %v239_v31 }
 0x227   :  { %v253_v35 = vmul.f32 %v292_v29, %v247_v32 }
 0x228   :  { %v241_v36 = vsub.f32 1.5, %v240_v34 }
 0x229   :  { %v259_v37 = vadd.f32 %v293_v33, %v253_v35 }
 0x22a   :  { %v242_v38 = vmul.f32 %v297_v26, %v241_v36 }
 0x22b   :  { %261 = vst.msk [vmem:[#allocation3] sm:$0xff] %vm31_vm0, %v259_v37 }
 0x22c   :  { %v246_v39 = vsel %vm245_vm7, %v297_v26, %v242_v38 }
 0x22d   :  { %v248_v40 = vmul.f32 %v246_v39, %v214_v10 }
 0x22f   :  { %v254_v41 = vmul.f32 %v292_v29, %v248_v40 }
 0x231   :  { %v260_v42 = vadd.f32 %v293_v33, %v254_v41 }
 0x233   :  { %262 = vst.msk [vmem:[#allocation3 + $0x8] sm:$0xff] %vm31_vm0, %v260_v42 }
 0x234   :  { %275 = dma.vmem_to_hbm [thread:$0]  %s268_s24, 256, %s270_s1, [#allocation4], %s326_s6, %s326_s6, %s327_s27  }
 0x235   :  { %322 = dma.done.wait [#allocation4], 256  }
 0x236   :  { %323 = vsyncadd [#allocation4], 4294967040 }
 0x237   :  { %280 = vsyncpa [#allocation4], 1 }

</bundles_post_ra>
